<compile_context>
chip_gen: v5e
topology: v5e:2x2
jax: 0.10.0
libtpu: 0.0.40
codegen_flags: <defaults>
</compile_context>

<pallas_src>
import functools

import jax
import jax.numpy as jnp
from jax import lax
from jax.experimental import pallas as pl
from jax.experimental.pallas import tpu as pltpu


def _swish(v):
    # swish(x) = x * sigmoid(x) = 0.5 * x * (tanh(0.5*x) + 1)
    # Single EUP transcendental per element, no approximation error.
    return 0.5 * v * (jnp.tanh(0.5 * v) + 1.0)


def net_kernel(x_ref, w_huv_ref, b_huv_ref, w_h_ref, b_h_ref,
               w_out_ref, b_out_ref, o_ref, *, matmul_dtype):
    h_n = w_h_ref.shape[1]
    x = x_ref[...].astype(matmul_dtype)                 # (tile_n, input_n)

    # Fused input layer + encoder1 + encoder2, contracting over input_n with
    # x kept in its natural (batch, input_n) layout (W @ x^T):
    #   (3*h_n, input_n) . (tile_n, input_n) -> (3*h_n, tile_n)
    huv = _swish(
        lax.dot_general(
            w_huv_ref[...].astype(matmul_dtype), x,
            dimension_numbers=(((1,), (1,)), ((), ())),
            preferred_element_type=jnp.float32)
        + b_huv_ref[...])
    H = huv[0:h_n, :]
    U = huv[h_n:2 * h_n, :]
    D = huv[2 * h_n:3 * h_n, :] - U                     # V - U, hoisted

    # Hidden layers (static python loop — h_sizes is a compile-time constant).
    for i in range(w_h_ref.shape[0]):
        z = _swish(
            jnp.dot(w_h_ref[i].astype(matmul_dtype), H.astype(matmul_dtype),
                    preferred_element_type=jnp.float32)
            + b_h_ref[i])
        H = U + z * D                                   # == (1-z)*U + z*V

    # Output layer (h_n -> 1): elementwise mul + sublane reduce instead of a
    # 1-column MXU matmul; result is a lane-dense (1, tile_n) row.
    y = jnp.sum(H * w_out_ref[...], axis=0, keepdims=True) + b_out_ref[...]
    o_ref[...] = _swish(y)


def _round_up(v, m):
    return -(-v // m) * m


def _min_grid_steps():
    """v7x has 2 TensorCores per chip that split a 'parallel' grid axis;
    v5e/v6e have 1, so grid=1 with the biggest tile is best there."""
    try:
        kind = jax.devices()[0].device_kind.lower()
    except Exception:
        return 1
    return 2 if "v7" in kind else 1


def _pick_tile(n, max_tile, min_steps):
    """Lane-axis tile (multiple of 128) and padded batch size."""
    n_pad = _round_up(n, 128)
    tile = min(max_tile, n_pad)
    if min_steps > 1:
        tile = min(tile, _round_up(-(-n_pad // min_steps), 128))
    tile = max(128, (tile // 128) * 128)
    n_pad = _round_up(n_pad, tile)
    return tile, n_pad


def _vmem_limit_bytes(tile_n, input_n, h_n, h_sizes):
    # x tile is lane-padded in VMEM (last dim input_n << 128), double-buffered.
    x_buf = 2 * tile_n * 128 * 4
    out_buf = 2 * tile_n * 4
    acts = 10 * h_n * tile_n * 4        # huv + H/U/D/z + temps (generous)
    weights = 2 * 4 * (3 * h_n * (input_n + 1)
                       + h_sizes * h_n * (h_n + 1) + h_n + 1)
    est = x_buf + out_buf + acts + weights + (4 << 20)
    # Keep well under v7x's 64 MiB physical VMEM; raise above small defaults.
    return int(min(max(est, 32 << 20), 56 << 20))


def pack_params(params):
    """One-time packing of parameters into kernel layout
    (out_features, in_features); do NOT call per forward pass."""
    return {
        "w_huv": jnp.concatenate(
            [params["w_in"], params["w_e1"], params["w_e2"]], axis=1).T,  # (3h, in)
        "b_huv": jnp.concatenate(
            [params["b_in"], params["b_e1"], params["b_e2"]], axis=1).T,  # (3h, 1)
        "w_h": jnp.transpose(params["w_h"], (0, 2, 1)),                   # (L, h, h)
        "b_h": jnp.transpose(params["b_h"], (0, 2, 1)),                   # (L, h, 1)
        "w_out": params["w_out"],                                         # (h, 1)
        "b_out": params["b_out"],                                         # (1, 1)
    }


def net_forward(x, packed, *, max_tile_n=8192, matmul_dtype=jnp.float32):
    """x: [N, input_n] float32, packed: output of pack_params.
    Returns [N, 1] float32."""
    N, input_n = x.shape
    h_n = packed["w_h"].shape[1]
    h_sizes = packed["w_h"].shape[0]

    tile_n, n_pad = _pick_tile(N, max_tile_n, _min_grid_steps())
    if n_pad != N:
        x = jnp.pad(x, ((0, n_pad - N), (0, 0)))
    grid = (n_pad // tile_n,)

    full = lambda shape: pl.BlockSpec(shape, lambda i, _s=shape: (0,) * len(_s))

    grid_spec = pltpu.PrefetchScalarGridSpec(
        num_scalar_prefetch=0,
        grid=grid,
        in_specs=[
            pl.BlockSpec((tile_n, input_n), lambda i: (i, 0)),    # x tile (natural layout)
            full((3 * h_n, input_n)), full((3 * h_n, 1)),         # fused in/enc
            full((h_sizes, h_n, h_n)), full((h_sizes, h_n, 1)),   # hidden stack
            full((h_n, 1)), full((1, 1)),                         # output layer
        ],
        out_specs=pl.BlockSpec((1, tile_n), lambda i: (0, i)),
    )

    out_t = pl.pallas_call(
        functools.partial(net_kernel, matmul_dtype=matmul_dtype),
        out_shape=jax.ShapeDtypeStruct((1, n_pad), jnp.float32),
        grid_spec=grid_spec,
        compiler_params=pltpu.CompilerParams(
            dimension_semantics=("parallel",),
            vmem_limit_bytes=_vmem_limit_bytes(tile_n, input_n, h_n, h_sizes)),
    )(x, packed["w_huv"], packed["b_huv"], packed["w_h"], packed["b_h"],
      packed["w_out"], packed["b_out"])

    return out_t[:, :N].T                                         # (N, 1)


def init_params(key, input_n, h_sizes, h_n):
    """Deterministic synthetic parameters (same shapes as the torch module,
    stored pre-transposed as (in_features, out_features))."""
    ks = jax.random.split(key, 8)
    scale = 0.1
    p = {
        "w_in":  scale * jax.random.normal(ks[0], (input_n, h_n), jnp.float32),
        "b_in":  scale * jax.random.normal(ks[1], (1, h_n), jnp.float32),
        "w_e1":  scale * jax.random.normal(ks[2], (input_n, h_n), jnp.float32),
        "b_e1":  scale * jax.random.normal(ks[3], (1, h_n), jnp.float32),
        "w_e2":  scale * jax.random.normal(ks[4], (input_n, h_n), jnp.float32),
        "b_e2":  scale * jax.random.normal(ks[5], (1, h_n), jnp.float32),
        "w_h":   scale * jax.random.normal(ks[6], (h_sizes, h_n, h_n), jnp.float32),
        "b_h":   scale * jax.random.normal(ks[7], (h_sizes, 1, h_n), jnp.float32),
    }
    ko = jax.random.split(ks[7], 2)
    p["w_out"] = scale * jax.random.normal(ko[0], (h_n, 1), jnp.float32)
    p["b_out"] = scale * jax.random.normal(ko[1], (1, 1), jnp.float32)
    return p


def net_ref(x, params):
    """Pure-JAX reference for verification (exact sigmoid)."""
    sw = lambda v: v * jax.nn.sigmoid(v)
    H = sw(x @ params["w_in"] + params["b_in"])
    U = sw(x @ params["w_e1"] + params["b_e1"])
    V = sw(x @ params["w_e2"] + params["b_e2"])
    for i in range(params["w_h"].shape[0]):
        z = sw(H @ params["w_h"][i] + params["b_h"][i])
        H = (1.0 - z) * U + z * V
    return sw(H @ params["w_out"] + params["b_out"])


if __name__ == "__main__":
    key = jax.random.PRNGKey(0)
    input_n, h_sizes, h_n = 3, 4, 32   # 3-D PINN input, 4 hidden layers, 32 neurons
    N = 256                            # collocation points

    kx, kp = jax.random.split(key)
    x = jax.random.normal(kx, (N, input_n), jnp.float32)
    params = init_params(kp, input_n, h_sizes, h_n)
    packed = pack_params(params)       # packed once, reused across forward passes

    out = jax.block_until_ready(net_forward(x, packed))
    ref = net_ref(x, params)

    assert out.shape == (N, 1)
    # Exact tanh-based swish + f32 matmuls -> tight tolerance vs. reference.
    assert jnp.allclose(out, ref, atol=1e-4, rtol=1e-4), "mismatch vs reference"
    print("KERNEL_OK")
</pallas_src>

<mosaic_0001>
module attributes {stable_mosaic.version = 11 : i64} {
  func.func @net_kernel(%arg0: i32, %arg1: memref<256x3xf32, #tpu.memory_space<vmem>>, %arg2: memref<96x3xf32, #tpu.memory_space<vmem>>, %arg3: memref<96x1xf32, #tpu.memory_space<vmem>>, %arg4: memref<4x32x32xf32, #tpu.memory_space<vmem>>, %arg5: memref<4x32x1xf32, #tpu.memory_space<vmem>>, %arg6: memref<32x1xf32, #tpu.memory_space<vmem>>, %arg7: memref<1x1xf32, #tpu.memory_space<vmem>>, %arg8: memref<1x256xf32, #tpu.memory_space<vmem>>) attributes {dimension_semantics = [#tpu.dimension_semantics<parallel>], iteration_bounds = array<i64: 1>, scalar_prefetch = 0 : i64, scratch_operands = 0 : i64, tpu.core_type = #tpu.core_type<tc>, window_params = [{transform_indices = @transform_0, window_bounds = array<i64: 256, 3>}, {pipeline_mode = #tpu.pipeline_mode<synchronous>, transform_indices = @transform_1, window_bounds = array<i64: 96, 3>}, {pipeline_mode = #tpu.pipeline_mode<synchronous>, transform_indices = @transform_2, window_bounds = array<i64: 96, 1>}, {pipeline_mode = #tpu.pipeline_mode<synchronous>, transform_indices = @transform_3, window_bounds = array<i64: 4, 32, 32>}, {pipeline_mode = #tpu.pipeline_mode<synchronous>, transform_indices = @transform_4, window_bounds = array<i64: 4, 32, 1>}, {pipeline_mode = #tpu.pipeline_mode<synchronous>, transform_indices = @transform_5, window_bounds = array<i64: 32, 1>}, {pipeline_mode = #tpu.pipeline_mode<synchronous>, transform_indices = @transform_6, window_bounds = array<i64: 1, 1>}, {transform_indices = @transform_7, window_bounds = array<i64: 1, 256>}]} {
    %c0 = arith.constant 0 : index
    %c0_0 = arith.constant 0 : index
    %0 = vector.load %arg1[%c0, %c0_0] : memref<256x3xf32, #tpu.memory_space<vmem>>, vector<256x3xf32>
    %c0_1 = arith.constant 0 : index
    %c0_2 = arith.constant 0 : index
    %1 = vector.load %arg2[%c0_1, %c0_2] : memref<96x3xf32, #tpu.memory_space<vmem>>, vector<96x3xf32>
    %cst = arith.constant dense<0.000000e+00> : vector<96x256xf32>
    %2 = tpu.matmul %1, %0, %cst {dimension_numbers = #tpu.dot_dimension_numbers<[1], [1], [0], [0], [0, 0, 1, 0], [], []>} : vector<96x3xf32>, vector<256x3xf32>, vector<96x256xf32> -> vector<96x256xf32>
    %c0_3 = arith.constant 0 : index
    %c0_4 = arith.constant 0 : index
    %3 = vector.load %arg3[%c0_3, %c0_4] : memref<96x1xf32, #tpu.memory_space<vmem>>, vector<96x1xf32>
    %4 = vector.broadcast %3 : vector<96x1xf32> to vector<96x256xf32>
    %5 = arith.addf %2, %4 : vector<96x256xf32>
    %cst_5 = arith.constant 5.000000e-01 : f32
    %6 = vector.broadcast %cst_5 : f32 to vector<96x256xf32>
    %7 = arith.mulf %6, %5 : vector<96x256xf32>
    %cst_6 = arith.constant 5.000000e-01 : f32
    %8 = vector.broadcast %cst_6 : f32 to vector<96x256xf32>
    %9 = arith.mulf %8, %5 : vector<96x256xf32>
    %10 = math.tanh %9 : vector<96x256xf32>
    %cst_7 = arith.constant 1.000000e+00 : f32
    %11 = vector.broadcast %cst_7 : f32 to vector<96x256xf32>
    %12 = arith.addf %10, %11 : vector<96x256xf32>
    %13 = arith.mulf %7, %12 : vector<96x256xf32>
    %14 = vector.extract_strided_slice %13 {offsets = [0, 0], sizes = [32, 256], strides = [1, 1]} : vector<96x256xf32> to vector<32x256xf32>
    %15 = vector.extract_strided_slice %13 {offsets = [32, 0], sizes = [32, 256], strides = [1, 1]} : vector<96x256xf32> to vector<32x256xf32>
    %16 = vector.extract_strided_slice %13 {offsets = [64, 0], sizes = [32, 256], strides = [1, 1]} : vector<96x256xf32> to vector<32x256xf32>
    %17 = arith.subf %16, %15 : vector<32x256xf32>
    %c0_8 = arith.constant 0 : index
    %c0_9 = arith.constant 0 : index
    %c0_10 = arith.constant 0 : index
    %18 = vector.load %arg4[%c0_8, %c0_9, %c0_10] : memref<4x32x32xf32, #tpu.memory_space<vmem>>, vector<1x32x32xf32>
    %19 = vector.shape_cast %18 : vector<1x32x32xf32> to vector<32x32xf32>
    %cst_11 = arith.constant dense<0.000000e+00> : vector<32x256xf32>
    %20 = tpu.matmul %19, %14, %cst_11 {dimension_numbers = #tpu.dot_dimension_numbers<[1], [0], [0], [1], [0, 0, 1, 1], [], []>} : vector<32x32xf32>, vector<32x256xf32>, vector<32x256xf32> -> vector<32x256xf32>
    %c0_12 = arith.constant 0 : index
    %c0_13 = arith.constant 0 : index
    %c0_14 = arith.constant 0 : index
    %21 = vector.load %arg5[%c0_12, %c0_13, %c0_14] : memref<4x32x1xf32, #tpu.memory_space<vmem>>, vector<1x32x1xf32>
    %22 = vector.shape_cast %21 : vector<1x32x1xf32> to vector<32x1xf32>
    %23 = vector.broadcast %22 : vector<32x1xf32> to vector<32x256xf32>
    %24 = arith.addf %20, %23 : vector<32x256xf32>
    %cst_15 = arith.constant 5.000000e-01 : f32
    %25 = vector.broadcast %cst_15 : f32 to vector<32x256xf32>
    %26 = arith.mulf %25, %24 : vector<32x256xf32>
    %cst_16 = arith.constant 5.000000e-01 : f32
    %27 = vector.broadcast %cst_16 : f32 to vector<32x256xf32>
    %28 = arith.mulf %27, %24 : vector<32x256xf32>
    %29 = math.tanh %28 : vector<32x256xf32>
    %cst_17 = arith.constant 1.000000e+00 : f32
    %30 = vector.broadcast %cst_17 : f32 to vector<32x256xf32>
    %31 = arith.addf %29, %30 : vector<32x256xf32>
    %32 = arith.mulf %26, %31 : vector<32x256xf32>
    %33 = arith.mulf %32, %17 : vector<32x256xf32>
    %34 = arith.addf %15, %33 : vector<32x256xf32>
    %c1 = arith.constant 1 : index
    %c0_18 = arith.constant 0 : index
    %c0_19 = arith.constant 0 : index
    %35 = vector.load %arg4[%c1, %c0_18, %c0_19] : memref<4x32x32xf32, #tpu.memory_space<vmem>>, vector<1x32x32xf32>
    %36 = vector.shape_cast %35 : vector<1x32x32xf32> to vector<32x32xf32>
    %cst_20 = arith.constant dense<0.000000e+00> : vector<32x256xf32>
    %37 = tpu.matmul %36, %34, %cst_20 {dimension_numbers = #tpu.dot_dimension_numbers<[1], [0], [0], [1], [0, 0, 1, 1], [], []>} : vector<32x32xf32>, vector<32x256xf32>, vector<32x256xf32> -> vector<32x256xf32>
    %c1_21 = arith.constant 1 : index
    %c0_22 = arith.constant 0 : index
    %c0_23 = arith.constant 0 : index
    %38 = vector.load %arg5[%c1_21, %c0_22, %c0_23] : memref<4x32x1xf32, #tpu.memory_space<vmem>>, vector<1x32x1xf32>
    %39 = vector.shape_cast %38 : vector<1x32x1xf32> to vector<32x1xf32>
    %40 = vector.broadcast %39 : vector<32x1xf32> to vector<32x256xf32>
    %41 = arith.addf %37, %40 : vector<32x256xf32>
    %cst_24 = arith.constant 5.000000e-01 : f32
    %42 = vector.broadcast %cst_24 : f32 to vector<32x256xf32>
    %43 = arith.mulf %42, %41 : vector<32x256xf32>
    %cst_25 = arith.constant 5.000000e-01 : f32
    %44 = vector.broadcast %cst_25 : f32 to vector<32x256xf32>
    %45 = arith.mulf %44, %41 : vector<32x256xf32>
    %46 = math.tanh %45 : vector<32x256xf32>
    %cst_26 = arith.constant 1.000000e+00 : f32
    %47 = vector.broadcast %cst_26 : f32 to vector<32x256xf32>
    %48 = arith.addf %46, %47 : vector<32x256xf32>
    %49 = arith.mulf %43, %48 : vector<32x256xf32>
    %50 = arith.mulf %49, %17 : vector<32x256xf32>
    %51 = arith.addf %15, %50 : vector<32x256xf32>
    %c2 = arith.constant 2 : index
    %c0_27 = arith.constant 0 : index
    %c0_28 = arith.constant 0 : index
    %52 = vector.load %arg4[%c2, %c0_27, %c0_28] : memref<4x32x32xf32, #tpu.memory_space<vmem>>, vector<1x32x32xf32>
    %53 = vector.shape_cast %52 : vector<1x32x32xf32> to vector<32x32xf32>
    %cst_29 = arith.constant dense<0.000000e+00> : vector<32x256xf32>
    %54 = tpu.matmul %53, %51, %cst_29 {dimension_numbers = #tpu.dot_dimension_numbers<[1], [0], [0], [1], [0, 0, 1, 1], [], []>} : vector<32x32xf32>, vector<32x256xf32>, vector<32x256xf32> -> vector<32x256xf32>
    %c2_30 = arith.constant 2 : index
    %c0_31 = arith.constant 0 : index
    %c0_32 = arith.constant 0 : index
    %55 = vector.load %arg5[%c2_30, %c0_31, %c0_32] : memref<4x32x1xf32, #tpu.memory_space<vmem>>, vector<1x32x1xf32>
    %56 = vector.shape_cast %55 : vector<1x32x1xf32> to vector<32x1xf32>
    %57 = vector.broadcast %56 : vector<32x1xf32> to vector<32x256xf32>
    %58 = arith.addf %54, %57 : vector<32x256xf32>
    %cst_33 = arith.constant 5.000000e-01 : f32
    %59 = vector.broadcast %cst_33 : f32 to vector<32x256xf32>
    %60 = arith.mulf %59, %58 : vector<32x256xf32>
    %cst_34 = arith.constant 5.000000e-01 : f32
    %61 = vector.broadcast %cst_34 : f32 to vector<32x256xf32>
    %62 = arith.mulf %61, %58 : vector<32x256xf32>
    %63 = math.tanh %62 : vector<32x256xf32>
    %cst_35 = arith.constant 1.000000e+00 : f32
    %64 = vector.broadcast %cst_35 : f32 to vector<32x256xf32>
    %65 = arith.addf %63, %64 : vector<32x256xf32>
    %66 = arith.mulf %60, %65 : vector<32x256xf32>
    %67 = arith.mulf %66, %17 : vector<32x256xf32>
    %68 = arith.addf %15, %67 : vector<32x256xf32>
    %c3 = arith.constant 3 : index
    %c0_36 = arith.constant 0 : index
    %c0_37 = arith.constant 0 : index
    %69 = vector.load %arg4[%c3, %c0_36, %c0_37] : memref<4x32x32xf32, #tpu.memory_space<vmem>>, vector<1x32x32xf32>
    %70 = vector.shape_cast %69 : vector<1x32x32xf32> to vector<32x32xf32>
    %cst_38 = arith.constant dense<0.000000e+00> : vector<32x256xf32>
    %71 = tpu.matmul %70, %68, %cst_38 {dimension_numbers = #tpu.dot_dimension_numbers<[1], [0], [0], [1], [0, 0, 1, 1], [], []>} : vector<32x32xf32>, vector<32x256xf32>, vector<32x256xf32> -> vector<32x256xf32>
    %c3_39 = arith.constant 3 : index
    %c0_40 = arith.constant 0 : index
    %c0_41 = arith.constant 0 : index
    %72 = vector.load %arg5[%c3_39, %c0_40, %c0_41] : memref<4x32x1xf32, #tpu.memory_space<vmem>>, vector<1x32x1xf32>
    %73 = vector.shape_cast %72 : vector<1x32x1xf32> to vector<32x1xf32>
    %74 = vector.broadcast %73 : vector<32x1xf32> to vector<32x256xf32>
    %75 = arith.addf %71, %74 : vector<32x256xf32>
    %cst_42 = arith.constant 5.000000e-01 : f32
    %76 = vector.broadcast %cst_42 : f32 to vector<32x256xf32>
    %77 = arith.mulf %76, %75 : vector<32x256xf32>
    %cst_43 = arith.constant 5.000000e-01 : f32
    %78 = vector.broadcast %cst_43 : f32 to vector<32x256xf32>
    %79 = arith.mulf %78, %75 : vector<32x256xf32>
    %80 = math.tanh %79 : vector<32x256xf32>
    %cst_44 = arith.constant 1.000000e+00 : f32
    %81 = vector.broadcast %cst_44 : f32 to vector<32x256xf32>
    %82 = arith.addf %80, %81 : vector<32x256xf32>
    %83 = arith.mulf %77, %82 : vector<32x256xf32>
    %84 = arith.mulf %83, %17 : vector<32x256xf32>
    %85 = arith.addf %15, %84 : vector<32x256xf32>
    %c0_45 = arith.constant 0 : index
    %c0_46 = arith.constant 0 : index
    %86 = vector.load %arg6[%c0_45, %c0_46] : memref<32x1xf32, #tpu.memory_space<vmem>>, vector<32x1xf32>
    %87 = vector.broadcast %86 : vector<32x1xf32> to vector<32x256xf32>
    %88 = arith.mulf %85, %87 : vector<32x256xf32>
    %cst_47 = arith.constant dense<0.000000e+00> : vector<256xf32>
    %89 = vector.multi_reduction <add>, %88, %cst_47 [0] : vector<32x256xf32> to vector<256xf32>
    %90 = vector.shape_cast %89 : vector<256xf32> to vector<1x256xf32>
    %c0_48 = arith.constant 0 : index
    %c0_49 = arith.constant 0 : index
    %91 = vector.load %arg7[%c0_48, %c0_49] : memref<1x1xf32, #tpu.memory_space<vmem>>, vector<1x1xf32>
    %92 = vector.broadcast %91 : vector<1x1xf32> to vector<1x256xf32>
    %93 = arith.addf %90, %92 : vector<1x256xf32>
    %cst_50 = arith.constant 5.000000e-01 : f32
    %94 = vector.broadcast %cst_50 : f32 to vector<1x256xf32>
    %95 = arith.mulf %94, %93 : vector<1x256xf32>
    %cst_51 = arith.constant 5.000000e-01 : f32
    %96 = vector.broadcast %cst_51 : f32 to vector<1x256xf32>
    %97 = arith.mulf %96, %93 : vector<1x256xf32>
    %98 = math.tanh %97 : vector<1x256xf32>
    %cst_52 = arith.constant 1.000000e+00 : f32
    %99 = vector.broadcast %cst_52 : f32 to vector<1x256xf32>
    %100 = arith.addf %98, %99 : vector<1x256xf32>
    %101 = arith.mulf %95, %100 : vector<1x256xf32>
    %c0_53 = arith.constant 0 : index
    %c0_54 = arith.constant 0 : index
    %102 = vector.load %arg8[%c0_53, %c0_54] : memref<1x256xf32, #tpu.memory_space<vmem>>, vector<1x256xf32>
    tpu.vector_store %arg8[%c0_53, %c0_54], %101 {strides = array<i32>} : memref<1x256xf32, #tpu.memory_space<vmem>>, vector<1x256xf32>,
    return
  }
  func.func @transform_0(%arg0: i32) -> (i32, i32) {
    %c0_i32 = arith.constant 0 : i32
    %c0_i32_0 = arith.constant 0 : i32
    return %arg0, %c0_i32 : i32, i32
  }
  func.func @transform_1(%arg0: i32) -> (i32, i32) {
    %c0_i32 = arith.constant 0 : i32
    %c0_i32_0 = arith.constant 0 : i32
    %c0_i32_1 = arith.constant 0 : i32
    return %c0_i32, %c0_i32_0 : i32, i32
  }
  func.func @transform_2(%arg0: i32) -> (i32, i32) {
    %c0_i32 = arith.constant 0 : i32
    %c0_i32_0 = arith.constant 0 : i32
    %c0_i32_1 = arith.constant 0 : i32
    return %c0_i32, %c0_i32_0 : i32, i32
  }
  func.func @transform_3(%arg0: i32) -> (i32, i32, i32) {
    %c0_i32 = arith.constant 0 : i32
    %c0_i32_0 = arith.constant 0 : i32
    %c0_i32_1 = arith.constant 0 : i32
    %c0_i32_2 = arith.constant 0 : i32
    return %c0_i32, %c0_i32_0, %c0_i32_1 : i32, i32, i32
  }
  func.func @transform_4(%arg0: i32) -> (i32, i32, i32) {
    %c0_i32 = arith.constant 0 : i32
    %c0_i32_0 = arith.constant 0 : i32
    %c0_i32_1 = arith.constant 0 : i32
    %c0_i32_2 = arith.constant 0 : i32
    return %c0_i32, %c0_i32_0, %c0_i32_1 : i32, i32, i32
  }
  func.func @transform_5(%arg0: i32) -> (i32, i32) {
    %c0_i32 = arith.constant 0 : i32
    %c0_i32_0 = arith.constant 0 : i32
    %c0_i32_1 = arith.constant 0 : i32
    return %c0_i32, %c0_i32_0 : i32, i32
  }
  func.func @transform_6(%arg0: i32) -> (i32, i32) {
    %c0_i32 = arith.constant 0 : i32
    %c0_i32_0 = arith.constant 0 : i32
    %c0_i32_1 = arith.constant 0 : i32
    return %c0_i32, %c0_i32_0 : i32, i32
  }
  func.func @transform_7(%arg0: i32) -> (i32, i32) {
    %c0_i32 = arith.constant 0 : i32
    %c0_i32_0 = arith.constant 0 : i32
    return %c0_i32, %arg0 : i32, i32
  }
}

</mosaic_0001>

<bundles_post_ra>
// kernel: tpu_custom_call.1
= control target key start
LH: loop header
LB: loop body
LE: loop exit
PB: predicated region body
PF: predicated region fallthrough
CT: control target
= control target key end

     0   :  { %s2046_s0 = inlined_call_operand.vmem [shape: f32[256,3], index: 0, kind: input, shape index: {}]   ;;  %s2047_s1 = inlined_call_operand.vmem [shape: f32[96,3], index: 1, kind: input, shape index: {}]   ;;  %s2048_s2 = inlined_call_operand.vmem [shape: f32[96,1], index: 2, kind: input, shape index: {}]   ;;  %s2049_s3 = inlined_call_operand.vmem [shape: f32[4,32,32], index: 3, kind: input, shape index: {}]   ;;  %s2050_s4 = inlined_call_operand.vmem [shape: f32[4,32,1], index: 4, kind: input, shape index: {}]   ;;  %s2051_s5 = inlined_call_operand.vmem [shape: f32[32,1], index: 5, kind: input, shape index: {}]   ;;  %s2052_s6 = inlined_call_operand.<no memory space> [shape: f32[1,1], index: 6, kind: input, shape index: {}]   ;;  %s2053_s7 = inlined_call_operand.hbm [shape: f32[1,256], index: 7, kind: output, shape index: {}]  }
   0x1   :  { %v12_v0 = vstv %s2052_s6 }
   0x2   :  { %13 = vst [vmem:[#allocation2] sm:$0x1] %v12_v0 }
   0x3   :  { %v44_v1 = vld [vmem:[%s2046_s0 + $0x78] sm:$0xff]  ;;  %vm145_vm0 = vcmask 23552   ;;  %v43_v3 = vld [vmem:[%s2046_s0 + $0x70] sm:$0xff]  ;;  %v1432_v5 = vmov 0   ;;  %v74_v7 = vld [vmem:[%s2048_s2 + $0x8] sm:$0xff] }
   0x4   :  { %v60_v2 = vld [vmem:[%s2046_s0 + $0xf8] sm:$0xff]  ;;  %1173 = vmatpush.xpose.msk.msra.mxu0 %vm145_vm0, %v44_v1  ;;  %v59_v4 = vld [vmem:[%s2046_s0 + $0xf0] sm:$0xff]  ;;  %1287 = vset.pattern.permute.xlu0 %v1432_v5  ;;  %v42_v8 = vld [vmem:[%s2046_s0 + $0x68] sm:$0xff] }
   0x5   :  { %1201 = vmatpush.xpose.msk.msra.mxu1 %vm145_vm0, %v60_v2  ;;  %v76_v6 = vld [vmem:[%s2048_s2 + $0x18] sm:$0xff]  ;;  %1288 = vset.pattern.permute.xlu1 %v1432_v5  ;;  %v58_v9 = vld [vmem:[%s2046_s0 + $0xe8] sm:$0xff]  ;;  %v75_v10 = vld [vmem:[%s2048_s2 + $0x10] sm:$0xff] }
   0x6   :  { %102 = vperm.xlu0 %1287, %v76_v6   ;;  %1289 = vset.pattern.permute.xlu2 %v1432_v5  ;;  %v73_v11 = vld [vmem:[%s2048_s2] sm:$0xff] }
   0x7   :  { %92 = vperm.xlu1 %1288, %v74_v7   ;;  %v41_v12 = vld [vmem:[%s2046_s0 + $0x60] sm:$0xff] }
   0x8   :  { %1174 = vmatpush.xpose.msk.msra.mxu0 %vm145_vm0, %v43_v3  ;;  %v57_v13 = vld [vmem:[%s2046_s0 + $0xe0] sm:$0xff] }
   0x9   :  { %1202 = vmatpush.xpose.msk.msra.mxu1 %vm145_vm0, %v59_v4 }
   0xc   :  { %1175 = vmatpush.xpose.msk.msra.mxu0 %vm145_vm0, %v42_v8 }
   0xd   :  { %1203 = vmatpush.xpose.msk.msra.mxu1 %vm145_vm0, %v58_v9 }
   0xe   :  { %14 = vsyncpa [#allocation4], 0  ;;  %97 = vperm.xlu0 %1287, %v75_v10   ;;  %v40_v14 = vld [vmem:[%s2046_s0 + $0x58] sm:$0xff]  ;;  %v79_v16 = vld [vmem:[%s2048_s2 + $0x30] sm:$0xff]  ;;  %vm516_vm1 = vcmask 261120   ;;  %s1164_s6 = sshll.u32 %s2053_s7, 4  ;;  %s1165_s6 = int_to_ptr.hbm [resolvable:$true] %s1164_s6 }
   0xf   :  { %87 = vperm.xlu1 %1288, %v73_v11   ;;  %v56_v15 = vld [vmem:[%s2046_s0 + $0xd8] sm:$0xff]  ;;  %v83_v17 = vld [vmem:[%s2048_s2 + $0x50] sm:$0xff]  ;;  %v38_v20 = vld [vmem:[%s2046_s0 + $0x48] sm:$0xff]  ;;  %vm1149_vm2 = vcmask 1040384  }
  0x10   :  { %1176 = vmatpush.xpose.msk.msra.mxu0 %vm145_vm0, %v41_v12  ;;  %v39_v18 = vld [vmem:[%s2046_s0 + $0x50] sm:$0xff]  ;;  %v54_v21 = vld [vmem:[%s2046_s0 + $0xc8] sm:$0xff]  ;;  %v37_v24 = vld [vmem:[%s2046_s0 + $0x40] sm:$0xff] }
  0x11   :  { %1204 = vmatpush.xpose.msk.msra.mxu1 %vm145_vm0, %v57_v13  ;;  %v55_v19 = vld [vmem:[%s2046_s0 + $0xd0] sm:$0xff]  ;;  %v78_v22 = vld [vmem:[%s2048_s2 + $0x28] sm:$0xff]  ;;  %v53_v25 = vld [vmem:[%s2046_s0 + $0xc0] sm:$0xff] }
  0x12   :  { %v82_v23 = vld [vmem:[%s2048_s2 + $0x48] sm:$0xff]  ;;  %v36_v26 = vld [vmem:[%s2046_s0 + $0x38] sm:$0xff]  ;;  %v77_v28 = vld [vmem:[%s2048_s2 + $0x20] sm:$0xff] }
  0x13   :  { %v52_v27 = vld [vmem:[%s2046_s0 + $0xb8] sm:$0xff]  ;;  %v81_v29 = vld [vmem:[%s2048_s2 + $0x40] sm:$0xff]  ;;  %v35_v30 = vld [vmem:[%s2046_s0 + $0x30] sm:$0xff] }
  0x14   :  { %1177 = vmatpush.xpose.msk.msra.mxu0 %vm145_vm0, %v40_v14  ;;  %v51_v31 = vld [vmem:[%s2046_s0 + $0xb0] sm:$0xff]  ;;  %v34_v32 = vld [vmem:[%s2046_s0 + $0x28] sm:$0xff]  ;;  %v492_v34 = vld [vmem:[%s2050_s4] sm:$0xff] }
  0x15   :  { %1205 = vmatpush.xpose.msk.msra.mxu1 %vm145_vm0, %v56_v15  ;;  %v50_v33 = vld [vmem:[%s2046_s0 + $0xa8] sm:$0xff]  ;;  %v1244_v35 = vld [vmem:[%s2050_s4 + $0x38] sm:$0xff]  ;;  %v33_v36 = vld [vmem:[%s2046_s0 + $0x20] sm:$0xff] }
  0x16   :  { %117 = vperm.xlu0 %1287, %v79_v16   ;;  %v49_v37 = vld [vmem:[%s2046_s0 + $0xa0] sm:$0xff]  ;;  %v32_v38 = vld [vmem:[%s2046_s0 + $0x18] sm:$0xff]  ;;  %v1242_v40 = vld [vmem:[%s2050_s4 + $0x28] sm:$0xff] }
  0x17   :  { %137 = vperm.xlu1 %1288, %v83_v17   ;;  %v48_v39 = vld [vmem:[%s2046_s0 + $0x98] sm:$0xff]  ;;  %v1241_v41 = vld [vmem:[%s2050_s4 + $0x20] sm:$0xff]  ;;  %v31_v42 = vld [vmem:[%s2046_s0 + $0x10] sm:$0xff] }
  0x18   :  { %1178 = vmatpush.xpose.msk.msra.mxu0 %vm145_vm0, %v39_v18  ;;  %v47_v43 = vld [vmem:[%s2046_s0 + $0x90] sm:$0xff]  ;;  %v30_v44 = vld [vmem:[%s2046_s0 + $0x8] sm:$0xff]  ;;  %v29_v48 = vld [vmem:[%s2046_s0] sm:$0xff] }
  0x19   :  { %1206 = vmatpush.xpose.msk.msra.mxu1 %vm145_vm0, %v55_v19  ;;  %v46_v45 = vld [vmem:[%s2046_s0 + $0x88] sm:$0xff]  ;;  %v1259_v46 = vld [vmem:[%s2050_s4 + $0x50] sm:$0xff]  ;;  %v45_v49 = vld [vmem:[%s2046_s0 + $0x80] sm:$0xff] }
  0x1a   :  { %v1258_v47 = vld [vmem:[%s2050_s4 + $0x48] sm:$0xff]  ;;  %v61_v50 = vld [vmem:[%s2047_s1] sm:$0xff]  ;;  %v1276_v54 = vld [vmem:[%s2050_s4 + $0x78] sm:$0xff] }
  0x1b   :  { %v1273_v51 = vld [vmem:[%s2050_s4 + $0x60] sm:$0xff]  ;;  %v1274_v52 = vld [vmem:[%s2050_s4 + $0x68] sm:$0xff]  ;;  %v63_v56 = vld [vmem:[%s2047_s1 + $0x10] sm:$0xff] }
  0x1c   :  { %1179 = vmatpush.xpose.msk.msra.mxu0 %vm145_vm0, %v38_v20  ;;  %v62_v53 = vld [vmem:[%s2047_s1 + $0x8] sm:$0xff]  ;;  %v1079_v55 = vld [vmem:[%s2051_s5] sm:$0xff]  ;;  %v1081_v57 = vld [vmem:[%s2051_s5 + $0x10] sm:$0xff] }
  0x1d   :  { %1207 = vmatpush.xpose.msk.msra.mxu1 %vm145_vm0, %v54_v21  ;;  %v1082_v58 = vld [vmem:[%s2051_s5 + $0x18] sm:$0xff]  ;;  %v65_v60 = vld [vmem:[%s2047_s1 + $0x20] sm:$0xff]  ;;  %v66_v61 = vld [vmem:[%s2047_s1 + $0x28] sm:$0xff] }
  0x1e   :  { %112 = vperm.xlu0 %1287, %v78_v22   ;;  %v64_v59 = vld [vmem:[%s2047_s1 + $0x18] sm:$0xff]  ;;  %v67_v62 = vld [vmem:[%s2047_s1 + $0x30] sm:$0xff]  ;;  %v69_v0 = vld [vmem:[%s2047_s1 + $0x40] sm:$0xff] }
  0x1f   :  { %132 = vperm.xlu1 %1288, %v82_v23   ;;  %v68_v63 = vld [vmem:[%s2047_s1 + $0x38] sm:$0xff]  ;;  %v70_v1 = vld [vmem:[%s2047_s1 + $0x48] sm:$0xff]  ;;  %v71_v2 = vld [vmem:[%s2047_s1 + $0x50] sm:$0xff] }
  0x20   :  { %1180 = vmatpush.xpose.msk.msra.mxu0 %vm145_vm0, %v37_v24  ;;  %v80_v3 = vld [vmem:[%s2048_s2 + $0x38] sm:$0xff]  ;;  %v494_v6 = vld [vmem:[%s2050_s4 + $0x10] sm:$0xff]  ;;  %v493_v10 = vld [vmem:[%s2050_s4 + $0x8] sm:$0xff] }
  0x21   :  { %1208 = vmatpush.xpose.msk.msra.mxu1 %vm145_vm0, %v53_v25  ;;  %122 = vperm.xlu2 %1289, %v80_v3   ;;  %v84_v4 = vld [vmem:[%s2048_s2 + $0x58] sm:$0xff]  ;;  %v1243_v15 = vld [vmem:[%s2050_s4 + $0x30] sm:$0xff]  ;;  %v489_v3 = vld [vmem:[%s2049_s3 + $0x8] sm:$0xff] }
  0x22   :  { %v495_v5 = vld [vmem:[%s2050_s4 + $0x18] sm:$0xff] }
  0x23   :  { %v72_v9 = vld [vmem:[%s2047_s1 + $0x58] sm:$0xff] }
  0x24   :  { %1181 = vmatpush.xpose.msk.msra.mxu0 %vm145_vm0, %v36_v26  ;;  %v1260_v23 = vld [vmem:[%s2050_s4 + $0x58] sm:$0xff] }
  0x25   :  { %1209 = vmatpush.xpose.msk.msra.mxu1 %vm145_vm0, %v52_v27 }
  0x26   :  { %107 = vperm.xlu0 %1287, %v77_v28  }
  0x27   :  { %127 = vperm.xlu1 %1288, %v81_v29  }
  0x28   :  { %1182 = vmatpush.xpose.msk.msra.mxu0 %vm145_vm0, %v35_v30 }
  0x29   :  { %1210 = vmatpush.xpose.msk.msra.mxu1 %vm145_vm0, %v51_v31  ;;  %142 = vperm.xlu2 %1289, %v84_v4   ;;  %v1129_v4 = vld [vmem:[#allocation2] sm:$0x1] }
  0x2c   :  { %1183 = vmatpush.xpose.msk.msra.mxu0 %vm145_vm0, %v34_v32 }
  0x2d   :  { %1211 = vmatpush.xpose.msk.msra.mxu1 %vm145_vm0, %v50_v33 }
  0x2e   :  { %498 = vperm.xlu0 %1287, %v492_v34  }
  0x2f   :  { %662 = vperm.xlu1 %1288, %v1244_v35  }
  0x30   :  { %1184 = vmatpush.xpose.msk.msra.mxu0 %vm145_vm0, %v33_v36 }
  0x31   :  { %1212 = vmatpush.xpose.msk.msra.mxu1 %vm145_vm0, %v49_v37  ;;  %513 = vperm.xlu2 %1289, %v495_v5   ;;  %v490_v5 = vld [vmem:[%s2049_s3 + $0x10] sm:$0xff] }
  0x34   :  { %1185 = vmatpush.xpose.msk.msra.mxu0 %vm145_vm0, %v32_v38 }
  0x35   :  { %1213 = vmatpush.xpose.msk.msra.mxu1 %vm145_vm0, %v48_v39  ;;  %v1257_v39 = vld [vmem:[%s2050_s4 + $0x40] sm:$0xff] }
  0x36   :  { %652 = vperm.xlu0 %1287, %v1242_v40  }
  0x37   :  { %647 = vperm.xlu1 %1288, %v1241_v41  }
  0x38   :  { %1186 = vmatpush.xpose.msk.msra.mxu0 %vm145_vm0, %v31_v42 }
  0x39   :  { %1214 = vmatpush.xpose.msk.msra.mxu1 %vm145_vm0, %v47_v43  ;;  %508 = vperm.xlu2 %1289, %v494_v6   ;;  %v491_v6 = vld [vmem:[%s2049_s3 + $0x18] sm:$0xff] }
  0x3c   :  { %1187 = vmatpush.xpose.msk.msra.mxu0 %vm145_vm0, %v30_v44 }
  0x3d   :  { %1215 = vmatpush.xpose.msk.msra.mxu1 %vm145_vm0, %v46_v45 }
  0x3e   :  { %805 = vperm.xlu0 %1287, %v1259_v46  }
  0x3f   :  { %800 = vperm.xlu1 %1288, %v1258_v47  }
  0x40   :  { %1188 = vmatpush.xpose.msk.msra.mxu0 %vm145_vm0, %v29_v48  ;;  %v1275_v48 = vld [vmem:[%s2050_s4 + $0x70] sm:$0xff] }
  0x41   :  { %1216 = vmatpush.xpose.msk.msra.mxu1 %vm145_vm0, %v45_v49  ;;  %503 = vperm.xlu2 %1289, %v493_v10  }
  0x43   :  { %1189 = vmatmul.msk.f32.vlgmr.msra.gmra.mxu0 %vm145_vm0, %v61_v50 }
  0x44   :  { %1217 = vmatmul.msk.f32.vlgmr.msra.gmra.mxu1 %vm145_vm0, %v61_v50 }
  0x46   :  { %943 = vperm.xlu0 %1287, %v1273_v51  }
  0x47   :  { %948 = vperm.xlu1 %1288, %v1274_v52  }
  0x49   :  { %657 = vperm.xlu2 %1289, %v1243_v15  }
  0x4b   :  { %1190 = vmatmul.msk.f32.gmra.mxu0 %vm145_vm0, %v62_v53 }
  0x4c   :  { %1218 = vmatmul.msk.f32.gmra.mxu1 %vm145_vm0, %v62_v53 }
  0x4e   :  { %958 = vperm.xlu0 %1287, %v1276_v54  }
  0x4f   :  { %1085 = vperm.xlu1 %1288, %v1079_v55  }
  0x51   :  { %810 = vperm.xlu2 %1289, %v1260_v23  }
  0x53   :  { %1191 = vmatmul.msk.f32.gmra.mxu0 %vm145_vm0, %v63_v56 }
  0x54   :  { %1219 = vmatmul.msk.f32.gmra.mxu1 %vm145_vm0, %v63_v56 }
  0x56   :  { %1095 = vperm.xlu0 %1287, %v1081_v57  }
  0x57   :  { %1100 = vperm.xlu1 %1288, %v1082_v58  }
  0x59   :  { %795 = vperm.xlu2 %1289, %v1257_v39  }
  0x5b   :  { %1192 = vmatmul.msk.f32.gmra.mxu0 %vm145_vm0, %v64_v59 }
  0x5c   :  { %1220 = vmatmul.msk.f32.gmra.mxu1 %vm145_vm0, %v64_v59 }
  0x61   :  { %953 = vperm.xlu2 %1289, %v1275_v48  }
  0x63   :  { %1193 = vmatmul.msk.f32.gmra.mxu0 %vm145_vm0, %v65_v60 }
  0x64   :  { %1221 = vmatmul.msk.f32.gmra.mxu1 %vm145_vm0, %v65_v60 }
  0x6b   :  { %1194 = vmatmul.msk.f32.gmra.mxu0 %vm145_vm0, %v66_v61 }
  0x6c   :  { %1222 = vmatmul.msk.f32.gmra.mxu1 %vm145_vm0, %v66_v61 }
  0x73   :  { %1195 = vmatmul.msk.f32.gmra.mxu0 %vm145_vm0, %v67_v62 }
  0x74   :  { %1223 = vmatmul.msk.f32.gmra.mxu1 %vm145_vm0, %v67_v62 }
  0x78   :  { %v103_v11 = vpop.permute.xlu0 %102 }
  0x79   :  { %v93_v14 = vpop.permute.xlu1 %92 }
  0x7b   :  { %1196 = vmatmul.msk.f32.gmra.mxu0 %vm145_vm0, %v68_v63  ;;  %v123_v15 = vpop.permute.xlu2 %122 }
  0x7c   :  { %1224 = vmatmul.msk.f32.gmra.mxu1 %vm145_vm0, %v68_v63 }
  0x80   :  { %v98_v19 = vpop.permute.xlu0 %97 }
  0x81   :  { %v88_v25 = vpop.permute.xlu1 %87 }
  0x83   :  { %1197 = vmatmul.msk.f32.gmra.mxu0 %vm145_vm0, %v69_v0 }
  0x84   :  { %1225 = vmatmul.msk.f32.gmra.mxu1 %vm145_vm0, %v69_v0  ;;  %v488_v0 = vld [vmem:[%s2049_s3] sm:$0xff] }
  0x8b   :  { %1198 = vmatmul.msk.f32.gmra.mxu0 %vm145_vm0, %v70_v1 }
  0x8c   :  { %1226 = vmatmul.msk.f32.gmra.mxu1 %vm145_vm0, %v70_v1  ;;  %v1080_v1 = vld [vmem:[%s2051_s5 + $0x8] sm:$0xff] }
  0x8d   :  { %1090 = vperm.xlu2 %1289, %v1080_v1  }
  0x93   :  { %1199 = vmatmul.msk.f32.gmra.mxu0 %vm145_vm0, %v71_v2 }
  0x94   :  { %1227 = vmatmul.msk.f32.gmra.mxu1 %vm145_vm0, %v71_v2 }
  0x95   :  { %1132 = vperm.xlu2 %1289, %v1129_v4  }
  0x9b   :  { %1200 = vmatmul.msk.f32.gmra.mxu0 %vm145_vm0, %v72_v9 }
  0x9c   :  { %1228 = vmatmul.msk.f32.gmra.mxu1 %vm145_vm0, %v72_v9 }
  0xc0   :  { %v295_v7 = vpop.f32.mrf.mxu0 }
  0xc1   :  { %v348_v8 = vpop.f32.mrf.mxu1  ;;  %v296_v27 = vadd.f32 %v295_v7, %v88_v25 }
  0xc2   :  { %v349_v29 = vadd.f32 %v348_v8, %v88_v25 }
  0xc3   :  { %v384_v35 = vmul.f32 0.5, %v296_v27 }
  0xc4   :  { %v385_v38 = vmul.f32 0.5, %v349_v29 }
  0xc8   :  { %v298_v12 = vpop.f32.mrf.mxu0 }
  0xc9   :  { %v351_v13 = vpop.f32.mrf.mxu1  ;;  %v299_v18 = vadd.f32 %v298_v12, %v93_v14 }
  0xca   :  { %v352_v20 = vadd.f32 %v351_v13, %v93_v14 }
  0xcb   :  { %v386_v24 = vmul.f32 0.5, %v299_v18 }
  0xcc   :  { %v387_v26 = vmul.f32 0.5, %v352_v20  ;;  %v143_v20 = vpop.permute.xlu2 %142 }
  0xcd   :  { %1290 = vtanh.f32 %v386_v24 }
  0xce   :  { %1292 = vtanh.f32 %v387_v26 }
  0xd0   :  { %v301_v16 = vpop.f32.mrf.mxu0 }
  0xd1   :  { %v354_v17 = vpop.f32.mrf.mxu1  ;;  %v302_v21 = vadd.f32 %v301_v16, %v98_v19  ;;  %v118_v16 = vpop.permute.xlu0 %117 }
  0xd2   :  { %v355_v22 = vadd.f32 %v354_v17, %v98_v19  ;;  %v138_v19 = vpop.permute.xlu1 %137 }
  0xd3   :  { %v388_v28 = vmul.f32 0.5, %v302_v21  ;;  %v1291_v40 = vpop.eup %1290 }
  0xd4   :  { %v389_v30 = vmul.f32 0.5, %v355_v22  ;;  %v1293_v41 = vpop.eup %1292  ;;  %v434_v54 = vadd.f32 1.0, %v1291_v40  ;;  %v1781_v25 = vpop.permute.xlu2 %513 }
  0xd5   :  { %1294 = vtanh.f32 %v388_v28  ;;  %v435_v56 = vadd.f32 1.0, %v1293_v41 }
  0xd6   :  { %1296 = vtanh.f32 %v389_v30  ;;  %v458_v61 = vmul.f32 %v434_v54, %v386_v24 }
  0xd7   :  { %v459_v62 = vmul.f32 %v435_v56, %v387_v26 }
  0xd8   :  { %v304_v31 = vpop.f32.mrf.mxu0 }
  0xd9   :  { %v357_v32 = vpop.f32.mrf.mxu1  ;;  %v305_v33 = vadd.f32 %v304_v31, %v103_v11  ;;  %v113_v21 = vpop.permute.xlu0 %112 }
  0xda   :  { %v358_v34 = vadd.f32 %v357_v32, %v103_v11  ;;  %v133_v24 = vpop.permute.xlu1 %132 }
  0xdb   :  { %v390_v36 = vmul.f32 0.5, %v305_v33  ;;  %v1295_v42 = vpop.eup %1294 }
  0xdc   :  { %v391_v37 = vmul.f32 0.5, %v358_v34  ;;  %v1297_v43 = vpop.eup %1296  ;;  %v436_v47 = vadd.f32 1.0, %v1295_v42 }
  0xdd   :  { %1298 = vtanh.f32 %v390_v36  ;;  %v437_v51 = vadd.f32 1.0, %v1297_v43 }
  0xde   :  { %1300 = vtanh.f32 %v391_v37  ;;  %v460_v57 = vmul.f32 %v436_v47, %v388_v28 }
  0xdf   :  { %1302 = vtanh.f32 %v384_v35  ;;  %v461_v59 = vmul.f32 %v437_v51, %v389_v30 }
  0xe0   :  { %1304 = vtanh.f32 %v385_v38  ;;  %v307_v7 = vpop.f32.mrf.mxu0 }
  0xe1   :  { %v360_v8 = vpop.f32.mrf.mxu1  ;;  %v108_v26 = vpop.permute.xlu0 %107 }
  0xe2   :  { %v308_v27 = vadd.f32 %v307_v7, %v108_v26  ;;  %v361_v28 = vadd.f32 %v360_v8, %v108_v26 }
  0xe3   :  { %v1299_v44 = vpop.eup %1298 }
  0xe4   :  { %v1301_v45 = vpop.eup %1300  ;;  %v438_v46 = vadd.f32 1.0, %v1299_v44  ;;  %v1787_v34 = vmul.f32 0.5, %v308_v27  ;;  %v509_v44 = vpop.permute.xlu2 %508 }
  0xe5   :  { %v1303_v49 = vpop.eup %1302  ;;  %v439_v50 = vadd.f32 1.0, %v1301_v45 }
  0xe6   :  { %v1305_v52 = vpop.eup %1304  ;;  %v462_v53 = vmul.f32 %v438_v46, %v390_v36  ;;  %v432_v58 = vadd.f32 1.0, %v1303_v49  ;;  %1306 = vtanh.f32 %v1787_v34 }
  0xe7   :  { %v463_v55 = vmul.f32 %v439_v50, %v391_v37  ;;  %v433_v60 = vadd.f32 1.0, %v1305_v52  ;;  %v128_v37 = vpop.permute.xlu1 %127 }
  0xe8   :  { %541 = vmatpush.msra.mxu2 %v462_v53  ;;  %v456_v63 = vmul.f32 %v432_v58, %v384_v35  ;;  %v310_v9 = vpop.f32.mrf.mxu0 }
  0xe9   :  { %570 = vmatpush.msra.mxu3 %v463_v55  ;;  %v457_v2 = vmul.f32 %v433_v60, %v385_v38  ;;  %v363_v10 = vpop.f32.mrf.mxu1  ;;  %v311_v30 = vadd.f32 %v310_v9, %v113_v21  ;;  %v1789_v38 = vmul.f32 0.5, %v361_v28 }
  0xea   :  { %542 = vmatpush.msra.mxu2 %v460_v57  ;;  %v364_v32 = vadd.f32 %v363_v10, %v113_v21 }
  0xeb   :  { %571 = vmatpush.msra.mxu3 %v461_v59  ;;  %v1791_v40 = vmul.f32 0.5, %v311_v30  ;;  %1308 = vtanh.f32 %v1789_v38 }
  0xec   :  { %543 = vmatpush.msra.mxu2 %v458_v61  ;;  %v1793_v42 = vmul.f32 0.5, %v364_v32  ;;  %v1307_v61 = vpop.eup %1306  ;;  %v504_v7 = vpop.permute.xlu2 %503 }
  0xed   :  { %572 = vmatpush.msra.mxu3 %v459_v62  ;;  %1310 = vtanh.f32 %v1791_v40  ;;  %v440_v30 = vadd.f32 1.0, %v1307_v61 }
  0xee   :  { %544 = vmatpush.msra.mxu2 %v456_v63  ;;  %1312 = vtanh.f32 %v1793_v42 }
  0xef   :  { %573 = vmatpush.msra.mxu3 %v457_v2  ;;  %1229 = vmatmul.msk.f32.vlgmr.msra.gmra.mxu2 %vm516_vm1, %v488_v0 }
  0xf0   :  { %1233 = vmatmul.msk.f32.vlgmr.msra.gmra.mxu3 %vm516_vm1, %v488_v0  ;;  %v313_v11 = vpop.f32.mrf.mxu0 }
  0xf1   :  { %v366_v12 = vpop.f32.mrf.mxu1  ;;  %v314_v35 = vadd.f32 %v313_v11, %v118_v16  ;;  %v1309_v0 = vpop.eup %1308 }
  0xf2   :  { %v367_v39 = vadd.f32 %v366_v12, %v118_v16 }
  0xf3   :  { %v1796_v45 = vmul.f32 0.5, %v314_v35 }
  0xf4   :  { %v1799_v47 = vmul.f32 0.5, %v367_v39 }
  0xf5   :  { %1314 = vtanh.f32 %v1796_v45 }
  0xf6   :  { %1316 = vtanh.f32 %v1799_v47 }
  0xf7   :  { %1230 = vmatmul.msk.f32.gmra.mxu2 %vm516_vm1, %v489_v3 }
  0xf8   :  { %1234 = vmatmul.msk.f32.gmra.mxu3 %vm516_vm1, %v489_v3  ;;  %v316_v13 = vpop.f32.mrf.mxu0  ;;  %v1311_v3 = vpop.eup %1310 }
  0xf9   :  { %v369_v14 = vpop.f32.mrf.mxu1  ;;  %v317_v46 = vadd.f32 %v316_v13, %v123_v15 }
  0xfa   :  { %v370_v48 = vadd.f32 %v369_v14, %v123_v15  ;;  %v499_v15 = vpop.permute.xlu0 %498 }
  0xfb   :  { %v1808_v57 = vmul.f32 0.5, %v317_v46 }
  0xfc   :  { %v1811_v60 = vmul.f32 0.5, %v370_v48  ;;  %v1854_v48 = vmul.f32 %v440_v30, %v1787_v34 }
  0xff   :  { %1231 = vmatmul.msk.f32.gmra.mxu2 %vm516_vm1, %v490_v5 }
 0x100   :  { %1235 = vmatmul.msk.f32.gmra.mxu3 %vm516_vm1, %v490_v5  ;;  %v319_v17 = vpop.f32.mrf.mxu0  ;;  %v1313_v5 = vpop.eup %1312 }
 0x101   :  { %v372_v18 = vpop.f32.mrf.mxu1  ;;  %v320_v41 = vadd.f32 %v319_v17, %v128_v37  ;;  %v1315_v9 = vpop.eup %1314 }
 0x102   :  { %v373_v43 = vadd.f32 %v372_v18, %v128_v37  ;;  %v1317_v14 = vpop.eup %1316 }
 0x103   :  { %v1802_v50 = vmul.f32 0.5, %v320_v41  ;;  %v442_v41 = vadd.f32 1.0, %v1311_v3 }
 0x104   :  { %v1805_v53 = vmul.f32 0.5, %v373_v43 }
 0x105   :  { %1318 = vtanh.f32 %v1802_v50 }
 0x106   :  { %1320 = vtanh.f32 %v1805_v53 }
 0x107   :  { %1232 = vmatmul.msk.f32.gmra.mxu2 %vm516_vm1, %v491_v6  ;;  %1322 = vtanh.f32 %v1808_v57 }
 0x108   :  { %1236 = vmatmul.msk.f32.gmra.mxu3 %vm516_vm1, %v491_v6  ;;  %v322_v22 = vpop.f32.mrf.mxu0  ;;  %1324 = vtanh.f32 %v1811_v60 }
 0x109   :  { %v375_v23 = vpop.f32.mrf.mxu1  ;;  %v323_v51 = vadd.f32 %v322_v22, %v133_v24 }
 0x10a   :  { %v376_v54 = vadd.f32 %v375_v23, %v133_v24 }
 0x10b   :  { %v1814_v62 = vmul.f32 0.5, %v323_v51 }
 0x10c   :  { %v1817_v1 = vmul.f32 0.5, %v376_v54  ;;  %v443_v54 = vadd.f32 1.0, %v1313_v5 }
 0x10d   :  { %1326 = vtanh.f32 %v1814_v62 }
 0x10e   :  { %1328 = vtanh.f32 %v1817_v1 }
 0x110   :  { %v325_v33 = vpop.f32.mrf.mxu0 }
 0x111   :  { %v378_v36 = vpop.f32.mrf.mxu1  ;;  %v326_v56 = vadd.f32 %v325_v33, %v138_v19  ;;  %v441_v33 = vadd.f32 1.0, %v1309_v0 }
 0x112   :  { %v379_v59 = vadd.f32 %v378_v36, %v138_v19  ;;  %v1319_v19 = vpop.eup %1318 }
 0x113   :  { %v1819_v4 = vmul.f32 0.5, %v326_v56  ;;  %v1321_v22 = vpop.eup %1320  ;;  %v448_v0 = vadd.f32 1.0, %v1319_v19 }
 0x114   :  { %v1822_v6 = vmul.f32 0.5, %v379_v59  ;;  %v1323_v26 = vpop.eup %1322  ;;  %v445_v59 = vadd.f32 1.0, %v1317_v14 }
 0x115   :  { %1330 = vtanh.f32 %v1819_v4  ;;  %v1325_v28 = vpop.eup %1324  ;;  %v446_v3 = vadd.f32 1.0, %v1323_v26  ;;  %v472_v19 = vmul.f32 %v448_v0, %v1802_v50 }
 0x116   :  { %1332 = vtanh.f32 %v1822_v6 }
 0x118   :  { %v328_v55 = vpop.f32.mrf.mxu0 }
 0x119   :  { %v381_v58 = vpop.f32.mrf.mxu1  ;;  %v329_v63 = vadd.f32 %v328_v55, %v143_v20 }
 0x11a   :  { %v382_v2 = vadd.f32 %v381_v58, %v143_v20  ;;  %v444_v58 = vadd.f32 1.0, %v1315_v9 }
 0x11b   :  { %v1826_v10 = vmul.f32 0.5, %v329_v63  ;;  %v1864_v63 = vmul.f32 %v442_v41, %v1791_v40  ;;  %v1873_v40 = vmul.f32 %v445_v59, %v1799_v47 }
 0x11c   :  { %v1829_v16 = vmul.f32 0.5, %v382_v2  ;;  %v1870_v14 = vmul.f32 %v444_v58, %v1796_v45 }
 0x11d   :  { %1334 = vtanh.f32 %v1826_v10 }
 0x11e   :  { %1336 = vtanh.f32 %v1829_v16 }
 0x172   :  { %v1783_v29 = vpop.f32.mrf.mxu2 }
 0x173   :  { %v1785_v31 = vpop.f32.mrf.mxu3  ;;  %v547_v20 = vadd.f32 %v1783_v29, %v499_v15  ;;  %v1327_v29 = vpop.eup %1326 }
 0x174   :  { %v576_v23 = vadd.f32 %v1785_v31, %v499_v15  ;;  %v1329_v31 = vpop.eup %1328  ;;  %v450_v15 = vadd.f32 1.0, %v1327_v29 }
 0x175   :  { %v1845_v35 = vmul.f32 0.5, %v547_v20  ;;  %v1331_v39 = vpop.eup %1330 }
 0x176   :  { %v1848_v36 = vmul.f32 0.5, %v576_v23  ;;  %v1333_v46 = vpop.eup %1332 }
 0x177   :  { %v1335_v51 = vpop.eup %1334  ;;  %v453_v9 = vadd.f32 1.0, %v1333_v46 }
 0x178   :  { %v1337_v56 = vpop.eup %1336  ;;  %v454_v5 = vadd.f32 1.0, %v1335_v51 }
 0x179   :  { %v477_v29 = vmul.f32 %v453_v9, %v1822_v6 }
 0x17a   :  { %v549_v49 = vpop.f32.mrf.mxu2  ;;  %v478_v45 = vmul.f32 %v454_v5, %v1826_v10 }
 0x17b   :  { %v578_v52 = vpop.f32.mrf.mxu3  ;;  %v550_v11 = vadd.f32 %v549_v49, %v504_v7 }
 0x17c   :  { %v579_v17 = vadd.f32 %v578_v52, %v504_v7  ;;  %v1859_v52 = vmul.f32 %v441_v33, %v1789_v38  ;;  %v452_v38 = vadd.f32 1.0, %v1331_v39 }
 0x17d   :  { %v1840_v27 = vmul.f32 0.5, %v550_v11  ;;  %v447_v11 = vadd.f32 1.0, %v1325_v28  ;;  %v1879_v28 = vmul.f32 %v446_v3, %v1808_v57 }
 0x17e   :  { %v1843_v32 = vmul.f32 0.5, %v579_v17  ;;  %v476_v26 = vmul.f32 %v452_v38, %v1819_v4 }
 0x17f   :  { %v1884_v33 = vmul.f32 %v447_v11, %v1811_v60  ;;  %v1895_v60 = vsub.f32 %v478_v45, %v1879_v28  ;;  %v1237_v11 = vld [vmem:[%s2049_s3 + $0x20] sm:$0xff] }
 0x180   :  { %v1892_v6 = vsub.f32 %v476_v26, %v1870_v14  ;;  %v658_v26 = vpop.permute.xlu2 %657 }
 0x182   :  { %v552_v8 = vpop.f32.mrf.mxu2 }
 0x183   :  { %v553_v12 = vadd.f32 %v552_v8, %v509_v44  ;;  %v581_v13 = vpop.f32.mrf.mxu3  ;;  %v1867_v8 = vmul.f32 %v443_v54, %v1793_v42 }
 0x184   :  { %v582_v18 = vadd.f32 %v581_v13, %v509_v44 }
 0x185   :  { %v1833_v21 = vmul.f32 0.5, %v553_v12  ;;  %v455_v12 = vadd.f32 1.0, %v1337_v56 }
 0x186   :  { %v1837_v24 = vmul.f32 0.5, %v582_v18 }
 0x187   :  { %1338 = vtanh.f32 %v1833_v21  ;;  %v479_v50 = vmul.f32 %v455_v12, %v1829_v16 }
 0x188   :  { %1340 = vtanh.f32 %v1837_v24 }
 0x189   :  { %1342 = vtanh.f32 %v1840_v27 }
 0x18a   :  { %v555_v37 = vpop.f32.mrf.mxu2  ;;  %1344 = vtanh.f32 %v1843_v32 }
 0x18b   :  { %v556_v43 = vadd.f32 %v555_v37, %v1781_v25  ;;  %v584_v44 = vpop.f32.mrf.mxu3  ;;  %1346 = vtanh.f32 %v1845_v35  ;;  %v474_v37 = vmul.f32 %v450_v15, %v1814_v62  ;;  %v1899_v62 = vsub.f32 %v477_v29, %v1873_v40  ;;  %v1239_v15 = vld [vmem:[%s2049_s3 + $0x30] sm:$0xff] }
 0x18c   :  { %v585_v49 = vadd.f32 %v584_v44, %v1781_v25  ;;  %1348 = vtanh.f32 %v1848_v36  ;;  %v449_v25 = vadd.f32 1.0, %v1321_v22  ;;  %v451_v22 = vadd.f32 1.0, %v1329_v31 }
 0x18d   :  { %v593_v55 = vmul.f32 0.5, %v556_v43  ;;  %v1339_v34 = vpop.eup %1338 }
 0x18e   :  { %v594_v61 = vmul.f32 0.5, %v585_v49  ;;  %v1341_v2 = vpop.eup %1340  ;;  %v607_v17 = vadd.f32 1.0, %v1339_v34  ;;  %v473_v20 = vmul.f32 %v449_v25, %v1805_v53  ;;  %v475_v41 = vmul.f32 %v451_v22, %v1817_v1 }
 0x18f   :  { %1350 = vtanh.f32 %v593_v55  ;;  %v1343_v7 = vpop.eup %1342  ;;  %v608_v42 = vadd.f32 1.0, %v1341_v2 }
 0x190   :  { %1352 = vtanh.f32 %v594_v61  ;;  %v1345_v13 = vpop.eup %1344  ;;  %v605_v30 = vadd.f32 1.0, %v1343_v7  ;;  %v615_v4 = vmul.f32 %v607_v17, %v1833_v21  ;;  %v1902_v21 = vsub.f32 %v479_v50, %v1884_v33  ;;  %v1240_v17 = vld [vmem:[%s2049_s3 + $0x38] sm:$0xff] }
 0x191   :  { %v1347_v18 = vpop.eup %1346  ;;  %v606_v53 = vadd.f32 1.0, %v1345_v13  ;;  %v616_v43 = vmul.f32 %v608_v42, %v1837_v24  ;;  %v1906_v24 = vsub.f32 %v474_v37, %v1864_v63  ;;  %v1923_v34 = vsub.f32 %v473_v20, %v1859_v52  ;;  %v1238_v13 = vld [vmem:[%s2049_s3 + $0x28] sm:$0xff]  ;;  %v663_v20 = vpop.permute.xlu1 %662 }
 0x192   :  { %v1349_v23 = vpop.eup %1348  ;;  %v603_v39 = vadd.f32 1.0, %v1347_v18  ;;  %v613_v16 = vmul.f32 %v605_v30, %v1840_v27  ;;  %v623_v56 = vmul.f32 %v615_v4, %v1892_v6  ;;  %v1912_v27 = vsub.f32 %v475_v41, %v1867_v8 }
 0x193   :  { %v604_v10 = vadd.f32 1.0, %v1349_v23  ;;  %v614_v1 = vmul.f32 %v606_v53, %v1843_v32  ;;  %v624_v59 = vmul.f32 %v616_v43, %v1899_v62  ;;  %v1918_v32 = vsub.f32 %v472_v19, %v1854_v48  ;;  %v653_v23 = vpop.permute.xlu0 %652 }
 0x194   :  { %v611_v51 = vmul.f32 %v603_v39, %v1845_v35  ;;  %v621_v35 = vmul.f32 %v613_v16, %v1906_v24 }
 0x195   :  { %v1351_v47 = vpop.eup %1350  ;;  %v622_v25 = vmul.f32 %v614_v1, %v1912_v27  ;;  %v632_v38 = vadd.f32 %v624_v59, %v1873_v40 }
 0x196   :  { %v1353_v31 = vpop.eup %1352  ;;  %v609_v57 = vadd.f32 1.0, %v1351_v47  ;;  %v619_v2 = vmul.f32 %v611_v51, %v1918_v32  ;;  %v629_v5 = vadd.f32 %v621_v35, %v1864_v63 }
 0x197   :  { %v610_v44 = vadd.f32 1.0, %v1353_v31  ;;  %v630_v7 = vadd.f32 %v622_v25, %v1867_v8 }
 0x198   :  { %v617_v46 = vmul.f32 %v609_v57, %v593_v55  ;;  %v612_v55 = vmul.f32 %v604_v10, %v1848_v36  ;;  %v631_v36 = vadd.f32 %v623_v56, %v1870_v14  ;;  %v627_v9 = vadd.f32 %v619_v2, %v1854_v48 }
 0x199   :  { %v618_v49 = vmul.f32 %v610_v44, %v594_v61  ;;  %v648_v50 = vpop.permute.xlu1 %647 }
 0x19a   :  { %v625_v54 = vmul.f32 %v617_v46, %v1895_v60  ;;  %v620_v3 = vmul.f32 %v612_v55, %v1923_v34 }
 0x19b   :  { %v626_v58 = vmul.f32 %v618_v49, %v1902_v21 }
 0x19c   :  { %v633_v61 = vadd.f32 %v625_v54, %v1879_v28  ;;  %v628_v12 = vadd.f32 %v620_v3, %v1859_v52 }
 0x19d   :  { %v634_v0 = vadd.f32 %v626_v58, %v1884_v33 }
 0x19e   :  { %689 = vmatpush.msrb.mxu2 %v633_v61 }
 0x19f   :  { %718 = vmatpush.msrb.mxu3 %v634_v0 }
 0x1a0   :  { %690 = vmatpush.msrb.mxu2 %v631_v36 }
 0x1a1   :  { %719 = vmatpush.msrb.mxu3 %v632_v38 }
 0x1a2   :  { %691 = vmatpush.msrb.mxu2 %v629_v5 }
 0x1a3   :  { %720 = vmatpush.msrb.mxu3 %v630_v7 }
 0x1a4   :  { %692 = vmatpush.msrb.mxu2 %v627_v9 }
 0x1a5   :  { %721 = vmatpush.msrb.mxu3 %v628_v12  ;;  %1245 = vmatmul.msk.f32.vlgmr.msrb.gmra.mxu2 %vm516_vm1, %v1237_v11 }
 0x1a6   :  { %1249 = vmatmul.msk.f32.vlgmr.msrb.gmra.mxu3 %vm516_vm1, %v1237_v11 }
 0x1ad   :  { %1246 = vmatmul.msk.f32.gmra.mxu2 %vm516_vm1, %v1238_v13 }
 0x1ae   :  { %1250 = vmatmul.msk.f32.gmra.mxu3 %vm516_vm1, %v1238_v13 }
 0x1b5   :  { %1247 = vmatmul.msk.f32.gmra.mxu2 %vm516_vm1, %v1239_v15 }
 0x1b6   :  { %1251 = vmatmul.msk.f32.gmra.mxu3 %vm516_vm1, %v1239_v15 }
 0x1bd   :  { %1248 = vmatmul.msk.f32.gmra.mxu2 %vm516_vm1, %v1240_v17 }
 0x1be   :  { %1252 = vmatmul.msk.f32.gmra.mxu3 %vm516_vm1, %v1240_v17 }
 0x228   :  { %v694_v18 = vpop.f32.mrf.mxu2 }
 0x229   :  { %v723_v19 = vpop.f32.mrf.mxu3  ;;  %v695_v37 = vadd.f32 %v694_v18, %v648_v50 }
 0x22a   :  { %v724_v4 = vadd.f32 %v723_v19, %v648_v50 }
 0x22b   :  { %v735_v43 = vmul.f32 0.5, %v695_v37 }
 0x22c   :  { %v736_v44 = vmul.f32 0.5, %v724_v4 }
 0x230   :  { %v697_v22 = vpop.f32.mrf.mxu2 }
 0x231   :  { %v726_v42 = vpop.f32.mrf.mxu3  ;;  %v698_v30 = vadd.f32 %v697_v22, %v653_v23 }
 0x232   :  { %v727_v53 = vadd.f32 %v726_v42, %v653_v23 }
 0x233   :  { %v737_v41 = vmul.f32 0.5, %v698_v30 }
 0x234   :  { %v738_v10 = vmul.f32 0.5, %v727_v53 }
 0x238   :  { %v700_v45 = vpop.f32.mrf.mxu2 }
 0x239   :  { %v701_v47 = vadd.f32 %v700_v45, %v658_v26  ;;  %v729_v29 = vpop.f32.mrf.mxu3 }
 0x23a   :  { %v730_v31 = vadd.f32 %v729_v29, %v658_v26 }
 0x23b   :  { %v739_v39 = vmul.f32 0.5, %v701_v47 }
 0x23c   :  { %v740_v57 = vmul.f32 0.5, %v730_v31 }
 0x23d   :  { %1354 = vtanh.f32 %v739_v39 }
 0x23e   :  { %1356 = vtanh.f32 %v740_v57 }
 0x23f   :  { %1358 = vtanh.f32 %v737_v41 }
 0x240   :  { %v703_v16 = vpop.f32.mrf.mxu2  ;;  %1360 = vtanh.f32 %v738_v10 }
 0x241   :  { %v704_v46 = vadd.f32 %v703_v16, %v663_v20  ;;  %v732_v1 = vpop.f32.mrf.mxu3  ;;  %1362 = vtanh.f32 %v735_v43  ;;  %v1255_v16 = vld [vmem:[%s2049_s3 + $0x50] sm:$0xff] }
 0x242   :  { %v733_v49 = vadd.f32 %v732_v1, %v663_v20  ;;  %1364 = vtanh.f32 %v736_v44 }
 0x243   :  { %v741_v51 = vmul.f32 0.5, %v704_v46  ;;  %v1355_v56 = vpop.eup %1354  ;;  %v1256_v46 = vld [vmem:[%s2049_s3 + $0x58] sm:$0xff] }
 0x244   :  { %v742_v54 = vmul.f32 0.5, %v733_v49  ;;  %v1357_v55 = vpop.eup %1356  ;;  %v755_v61 = vadd.f32 1.0, %v1355_v56 }
 0x245   :  { %1366 = vtanh.f32 %v741_v51  ;;  %v1359_v58 = vpop.eup %1358  ;;  %v756_v0 = vadd.f32 1.0, %v1357_v55  ;;  %v806_v55 = vpop.permute.xlu0 %805 }
 0x246   :  { %1368 = vtanh.f32 %v742_v54  ;;  %v1361_v59 = vpop.eup %1360  ;;  %v753_v36 = vadd.f32 1.0, %v1359_v58  ;;  %v763_v7 = vmul.f32 %v755_v61, %v739_v39  ;;  %v801_v58 = vpop.permute.xlu1 %800 }
 0x247   :  { %v1363_v35 = vpop.eup %1362  ;;  %v754_v38 = vadd.f32 1.0, %v1361_v59  ;;  %v764_v12 = vmul.f32 %v756_v0, %v740_v57 }
 0x248   :  { %v1365_v25 = vpop.eup %1364  ;;  %v751_v5 = vadd.f32 1.0, %v1363_v35  ;;  %v761_v15 = vmul.f32 %v753_v36, %v737_v41  ;;  %v771_v22 = vmul.f32 %v763_v7, %v1892_v6 }
 0x249   :  { %v752_v11 = vadd.f32 1.0, %v1365_v25  ;;  %v762_v18 = vmul.f32 %v754_v38, %v738_v10  ;;  %v772_v26 = vmul.f32 %v764_v12, %v1899_v62  ;;  %v1253_v10 = vld [vmem:[%s2049_s3 + $0x40] sm:$0xff] }
 0x24a   :  { %v759_v20 = vmul.f32 %v751_v5, %v735_v43  ;;  %v769_v30 = vmul.f32 %v761_v15, %v1906_v24  ;;  %v779_v31 = vadd.f32 %v771_v22, %v1870_v14 }
 0x24b   :  { %v1367_v2 = vpop.eup %1366  ;;  %v760_v23 = vmul.f32 %v752_v11, %v736_v44  ;;  %v770_v29 = vmul.f32 %v762_v18, %v1912_v27  ;;  %v780_v39 = vadd.f32 %v772_v26, %v1873_v40  ;;  %v1254_v44 = vld [vmem:[%s2049_s3 + $0x48] sm:$0xff] }
 0x24c   :  { %v1369_v3 = vpop.eup %1368  ;;  %v757_v9 = vadd.f32 1.0, %v1367_v2  ;;  %v767_v53 = vmul.f32 %v759_v20, %v1918_v32  ;;  %v777_v4 = vadd.f32 %v769_v30, %v1864_v63 }
 0x24d   :  { %v758_v13 = vadd.f32 1.0, %v1369_v3  ;;  %v768_v37 = vmul.f32 %v760_v23, %v1923_v34  ;;  %v778_v57 = vadd.f32 %v770_v29, %v1867_v8 }
 0x24e   :  { %v765_v17 = vmul.f32 %v757_v9, %v741_v51  ;;  %v775_v41 = vadd.f32 %v767_v53, %v1854_v48  ;;  %v811_v51 = vpop.permute.xlu2 %810 }
 0x24f   :  { %v766_v19 = vmul.f32 %v758_v13, %v742_v54  ;;  %v776_v43 = vadd.f32 %v768_v37, %v1859_v52 }
 0x250   :  { %v773_v42 = vmul.f32 %v765_v17, %v1895_v60 }
 0x251   :  { %v774_v45 = vmul.f32 %v766_v19, %v1902_v21 }
 0x252   :  { %v781_v47 = vadd.f32 %v773_v42, %v1879_v28 }
 0x253   :  { %v782_v50 = vadd.f32 %v774_v45, %v1884_v33 }
 0x254   :  { %837 = vmatpush.msra.mxu2 %v781_v47 }
 0x255   :  { %866 = vmatpush.msra.mxu3 %v782_v50 }
 0x256   :  { %838 = vmatpush.msra.mxu2 %v779_v31  ;;  %v796_v25 = vpop.permute.xlu2 %795 }
 0x257   :  { %867 = vmatpush.msra.mxu3 %v780_v39 }
 0x258   :  { %839 = vmatpush.msra.mxu2 %v777_v4 }
 0x259   :  { %868 = vmatpush.msra.mxu3 %v778_v57 }
 0x25a   :  { %840 = vmatpush.msra.mxu2 %v775_v41 }
 0x25b   :  { %869 = vmatpush.msra.mxu3 %v776_v43  ;;  %1261 = vmatmul.msk.f32.vlgmr.msra.gmra.mxu2 %vm516_vm1, %v1253_v10 }
 0x25c   :  { %1265 = vmatmul.msk.f32.vlgmr.msra.gmra.mxu3 %vm516_vm1, %v1253_v10 }
 0x263   :  { %1262 = vmatmul.msk.f32.gmra.mxu2 %vm516_vm1, %v1254_v44 }
 0x264   :  { %1266 = vmatmul.msk.f32.gmra.mxu3 %vm516_vm1, %v1254_v44 }
 0x26b   :  { %1263 = vmatmul.msk.f32.gmra.mxu2 %vm516_vm1, %v1255_v16 }
 0x26c   :  { %1267 = vmatmul.msk.f32.gmra.mxu3 %vm516_vm1, %v1255_v16 }
 0x273   :  { %1264 = vmatmul.msk.f32.gmra.mxu2 %vm516_vm1, %v1256_v46 }
 0x274   :  { %1268 = vmatmul.msk.f32.gmra.mxu3 %vm516_vm1, %v1256_v46 }
 0x2de   :  { %v842_v1 = vpop.f32.mrf.mxu2 }
 0x2df   :  { %v871_v49 = vpop.f32.mrf.mxu3  ;;  %v843_v38 = vadd.f32 %v842_v1, %v796_v25 }
 0x2e0   :  { %v872_v5 = vadd.f32 %v871_v49, %v796_v25 }
 0x2e1   :  { %v883_v12 = vmul.f32 0.5, %v843_v38 }
 0x2e2   :  { %v884_v13 = vmul.f32 0.5, %v872_v5 }
 0x2e6   :  { %v845_v54 = vpop.f32.mrf.mxu2 }
 0x2e7   :  { %v874_v56 = vpop.f32.mrf.mxu3  ;;  %v846_v61 = vadd.f32 %v845_v54, %v801_v58 }
 0x2e8   :  { %v875_v36 = vadd.f32 %v874_v56, %v801_v58 }
 0x2e9   :  { %v885_v9 = vmul.f32 0.5, %v846_v61 }
 0x2ea   :  { %v886_v11 = vmul.f32 0.5, %v875_v36 }
 0x2ee   :  { %v848_v59 = vpop.f32.mrf.mxu2 }
 0x2ef   :  { %v849_v35 = vadd.f32 %v848_v59, %v806_v55  ;;  %v877_v0 = vpop.f32.mrf.mxu3 }
 0x2f0   :  { %v878_v2 = vadd.f32 %v877_v0, %v806_v55 }
 0x2f1   :  { %v887_v3 = vmul.f32 0.5, %v849_v35 }
 0x2f2   :  { %v888_v7 = vmul.f32 0.5, %v878_v2 }
 0x2f3   :  { %1370 = vtanh.f32 %v887_v3 }
 0x2f4   :  { %1372 = vtanh.f32 %v888_v7 }
 0x2f5   :  { %1374 = vtanh.f32 %v885_v9 }
 0x2f6   :  { %v851_v15 = vpop.f32.mrf.mxu2  ;;  %1376 = vtanh.f32 %v886_v11 }
 0x2f7   :  { %v852_v17 = vadd.f32 %v851_v15, %v811_v51  ;;  %v880_v18 = vpop.f32.mrf.mxu3  ;;  %1378 = vtanh.f32 %v883_v12  ;;  %v1271_v15 = vld [vmem:[%s2049_s3 + $0x70] sm:$0xff] }
 0x2f8   :  { %v881_v19 = vadd.f32 %v880_v18, %v811_v51  ;;  %1380 = vtanh.f32 %v884_v13 }
 0x2f9   :  { %v889_v20 = vmul.f32 0.5, %v852_v17  ;;  %v1371_v42 = vpop.eup %1370  ;;  %v1272_v17 = vld [vmem:[%s2049_s3 + $0x78] sm:$0xff] }
 0x2fa   :  { %v890_v22 = vmul.f32 0.5, %v881_v19  ;;  %v1373_v23 = vpop.eup %1372  ;;  %v903_v30 = vadd.f32 1.0, %v1371_v42  ;;  %v949_v42 = vpop.permute.xlu1 %948 }
 0x2fb   :  { %1382 = vtanh.f32 %v889_v20  ;;  %v1375_v26 = vpop.eup %1374  ;;  %v904_v29 = vadd.f32 1.0, %v1373_v23 }
 0x2fc   :  { %1384 = vtanh.f32 %v890_v22  ;;  %v1377_v45 = vpop.eup %1376  ;;  %v901_v53 = vadd.f32 1.0, %v1375_v26  ;;  %v911_v57 = vmul.f32 %v903_v30, %v887_v3 }
 0x2fd   :  { %v1379_v47 = vpop.eup %1378  ;;  %v902_v37 = vadd.f32 1.0, %v1377_v45  ;;  %v912_v43 = vmul.f32 %v904_v29, %v888_v7 }
 0x2fe   :  { %v1381_v50 = vpop.eup %1380  ;;  %v899_v4 = vadd.f32 1.0, %v1379_v47  ;;  %v909_v16 = vmul.f32 %v901_v53, %v885_v9  ;;  %v919_v54 = vmul.f32 %v911_v57, %v1892_v6 }
 0x2ff   :  { %v900_v10 = vadd.f32 1.0, %v1381_v50  ;;  %v910_v1 = vmul.f32 %v902_v37, %v886_v11  ;;  %v920_v58 = vmul.f32 %v912_v43, %v1899_v62  ;;  %v1269_v11 = vld [vmem:[%s2049_s3 + $0x60] sm:$0xff]  ;;  %v954_v37 = vpop.permute.xlu2 %953 }
 0x300   :  { %v907_v51 = vmul.f32 %v899_v4, %v883_v12  ;;  %v917_v61 = vmul.f32 %v909_v16, %v1906_v24  ;;  %v927_v2 = vadd.f32 %v919_v54, %v1870_v14 }
 0x301   :  { %v1383_v31 = vpop.eup %1382  ;;  %v908_v55 = vmul.f32 %v900_v10, %v884_v13  ;;  %v918_v0 = vmul.f32 %v910_v1, %v1912_v27  ;;  %v928_v3 = vadd.f32 %v920_v58, %v1873_v40  ;;  %v1270_v13 = vld [vmem:[%s2049_s3 + $0x68] sm:$0xff]  ;;  %s1433_s3 = smov [#allocation3]  }
 0x302   :  { %v1385_v39 = vpop.eup %1384  ;;  %v905_v41 = vadd.f32 1.0, %v1383_v31  ;;  %v915_v36 = vmul.f32 %v907_v51, %v1918_v32  ;;  %v925_v5 = vadd.f32 %v917_v61, %v1864_v63  ;;  %s1162_s8 = sshll.u32 %s1433_s3, 4  ;;  %s1163_s8 = int_to_ptr.vmem [resolvable:$true] %s1162_s8 }
 0x303   :  { %v906_v44 = vadd.f32 1.0, %v1385_v39  ;;  %v916_v38 = vmul.f32 %v908_v55, %v1923_v34  ;;  %v926_v7 = vadd.f32 %v918_v0, %v1867_v8 }
 0x304   :  { %v913_v46 = vmul.f32 %v905_v41, %v889_v20  ;;  %v923_v9 = vadd.f32 %v915_v36, %v1854_v48  ;;  %v944_v20 = vpop.permute.xlu0 %943 }
 0x305   :  { %v914_v49 = vmul.f32 %v906_v44, %v890_v22  ;;  %v924_v12 = vadd.f32 %v916_v38, %v1859_v52 }
 0x306   :  { %v921_v56 = vmul.f32 %v913_v46, %v1895_v60 }
 0x307   :  { %v922_v59 = vmul.f32 %v914_v49, %v1902_v21 }
 0x308   :  { %v929_v35 = vadd.f32 %v921_v56, %v1879_v28 }
 0x309   :  { %v930_v25 = vadd.f32 %v922_v59, %v1884_v33 }
 0x30a   :  { %985 = vmatpush.msrb.mxu2 %v929_v35 }
 0x30b   :  { %1014 = vmatpush.msrb.mxu3 %v930_v25 }
 0x30c   :  { %986 = vmatpush.msrb.mxu2 %v927_v2  ;;  %v959_v54 = vpop.permute.xlu0 %958 }
 0x30d   :  { %1015 = vmatpush.msrb.mxu3 %v928_v3 }
 0x30e   :  { %987 = vmatpush.msrb.mxu2 %v925_v5 }
 0x30f   :  { %1016 = vmatpush.msrb.mxu3 %v926_v7 }
 0x310   :  { %988 = vmatpush.msrb.mxu2 %v923_v9 }
 0x311   :  { %1017 = vmatpush.msrb.mxu3 %v924_v12  ;;  %1277 = vmatmul.msk.f32.vlgmr.msrb.gmra.mxu2 %vm516_vm1, %v1269_v11 }
 0x312   :  { %1281 = vmatmul.msk.f32.vlgmr.msrb.gmra.mxu3 %vm516_vm1, %v1269_v11 }
 0x319   :  { %1278 = vmatmul.msk.f32.gmra.mxu2 %vm516_vm1, %v1270_v13 }
 0x31a   :  { %1282 = vmatmul.msk.f32.gmra.mxu3 %vm516_vm1, %v1270_v13 }
 0x321   :  { %1279 = vmatmul.msk.f32.gmra.mxu2 %vm516_vm1, %v1271_v15 }
 0x322   :  { %1283 = vmatmul.msk.f32.gmra.mxu3 %vm516_vm1, %v1271_v15 }
 0x329   :  { %1280 = vmatmul.msk.f32.gmra.mxu2 %vm516_vm1, %v1272_v17 }
 0x32a   :  { %1284 = vmatmul.msk.f32.gmra.mxu3 %vm516_vm1, %v1272_v17 }
 0x394   :  { %v990_v18 = vpop.f32.mrf.mxu2 }
 0x395   :  { %v1019_v19 = vpop.f32.mrf.mxu3  ;;  %v991_v22 = vadd.f32 %v990_v18, %v944_v20 }
 0x396   :  { %v1020_v23 = vadd.f32 %v1019_v19, %v944_v20  ;;  %v1086_v20 = vpop.permute.xlu1 %1085 }
 0x397   :  { %v1031_v29 = vmul.f32 0.5, %v991_v22 }
 0x398   :  { %v1032_v53 = vmul.f32 0.5, %v1020_v23 }
 0x39c   :  { %v993_v26 = vpop.f32.mrf.mxu2 }
 0x39d   :  { %v994_v45 = vadd.f32 %v993_v26, %v949_v42  ;;  %v1022_v30 = vpop.f32.mrf.mxu3 }
 0x39e   :  { %v1023_v47 = vadd.f32 %v1022_v30, %v949_v42 }
 0x39f   :  { %v1033_v50 = vmul.f32 0.5, %v994_v45 }
 0x3a0   :  { %v1034_v31 = vmul.f32 0.5, %v1023_v47 }
 0x3a1   :  { %1386 = vtanh.f32 %v1033_v50 }
 0x3a2   :  { %1388 = vtanh.f32 %v1034_v31 }
 0x3a3   :  { %1390 = vtanh.f32 %v1031_v29 }
 0x3a4   :  { %1392 = vtanh.f32 %v1032_v53  ;;  %v996_v39 = vpop.f32.mrf.mxu2 }
 0x3a5   :  { %v997_v4 = vadd.f32 %v996_v39, %v954_v37  ;;  %v1025_v57 = vpop.f32.mrf.mxu3 }
 0x3a6   :  { %v1026_v41 = vadd.f32 %v1025_v57, %v954_v37 }
 0x3a7   :  { %v1387_v10 = vpop.eup %1386  ;;  %v1035_v43 = vmul.f32 0.5, %v997_v4 }
 0x3a8   :  { %v1389_v44 = vpop.eup %1388  ;;  %v1036_v16 = vmul.f32 0.5, %v1026_v41  ;;  %v1049_v49 = vadd.f32 1.0, %v1387_v10 }
 0x3a9   :  { %v1391_v46 = vpop.eup %1390  ;;  %1394 = vtanh.f32 %v1035_v43  ;;  %v1050_v51 = vadd.f32 1.0, %v1389_v44 }
 0x3aa   :  { %v1393_v1 = vpop.eup %1392  ;;  %1396 = vtanh.f32 %v1036_v16  ;;  %v1047_v56 = vadd.f32 1.0, %v1391_v46  ;;  %v1057_v35 = vmul.f32 %v1049_v49, %v1033_v50 }
 0x3ab   :  { %v1048_v58 = vadd.f32 1.0, %v1393_v1  ;;  %v1058_v36 = vmul.f32 %v1050_v51, %v1034_v31 }
 0x3ac   :  { %v999_v55 = vpop.f32.mrf.mxu2  ;;  %v1055_v3 = vmul.f32 %v1047_v56, %v1031_v29  ;;  %v1065_v12 = vmul.f32 %v1057_v35, %v1906_v24  ;;  %v1091_v29 = vpop.permute.xlu2 %1090 }
 0x3ad   :  { %v1000_v59 = vadd.f32 %v999_v55, %v959_v54  ;;  %v1028_v61 = vpop.f32.mrf.mxu3  ;;  %v1056_v9 = vmul.f32 %v1048_v58, %v1032_v53  ;;  %v1066_v15 = vmul.f32 %v1058_v36, %v1912_v27 }
 0x3ae   :  { %v1029_v0 = vadd.f32 %v1028_v61, %v959_v54  ;;  %v1063_v18 = vmul.f32 %v1055_v3, %v1918_v32  ;;  %v1073_v23 = vadd.f32 %v1065_v12, %v1864_v63  ;;  %v1152_v12 = vlaneseq }
 0x3af   :  { %v1395_v25 = vpop.eup %1394  ;;  %v1037_v2 = vmul.f32 0.5, %v1000_v59  ;;  %v1064_v22 = vmul.f32 %v1056_v9, %v1923_v34  ;;  %v1074_v45 = vadd.f32 %v1066_v15, %v1867_v8 }
 0x3b0   :  { %v1397_v38 = vpop.eup %1396  ;;  %v1051_v5 = vadd.f32 1.0, %v1395_v25  ;;  %v1038_v7 = vmul.f32 0.5, %v1029_v0  ;;  %v1071_v30 = vadd.f32 %v1063_v18, %v1854_v48  ;;  %v1105_v34 = vmul.f32 %v1091_v29, %v1073_v23 }
 0x3b1   :  { %v1052_v11 = vadd.f32 1.0, %v1397_v38  ;;  %1398 = vtanh.f32 %v1037_v2  ;;  %v1072_v32 = vadd.f32 %v1064_v22, %v1859_v52  ;;  %v1106_v31 = vmul.f32 %v1091_v29, %v1074_v45  ;;  %v1101_v52 = vpop.permute.xlu1 %1100 }
 0x3b2   :  { %v1059_v13 = vmul.f32 %v1051_v5, %v1035_v43  ;;  %1400 = vtanh.f32 %v1038_v7  ;;  %v1103_v37 = vmul.f32 %v1086_v20, %v1071_v30  ;;  %vm1154_vm3 = vcmp.lt.s32.totalorder %v1152_v12, 256 }
 0x3b3   :  { %v1060_v17 = vmul.f32 %v1052_v11, %v1036_v16  ;;  %v1104_v4 = vmul.f32 %v1086_v20, %v1072_v32 }
 0x3b4   :  { %v1067_v19 = vmul.f32 %v1059_v13, %v1892_v6  ;;  %v1111_v57 = vadd.f32 %v1105_v34, %v1103_v37  ;;  %v1133_v59 = vpop.permute.xlu2 %1132 }
 0x3b5   :  { %v1068_v42 = vmul.f32 %v1060_v17, %v1899_v62  ;;  %v1096_v62 = vpop.permute.xlu0 %1095  ;;  %v1120_v10 = vadd.f32 %v1106_v31, %v1104_v4  ;;  %v1135_v0 = vperm.slane %v1133_v59, 0 }
 0x3b6   :  { %v1075_v27 = vadd.f32 %v1067_v19, %v1870_v14 }
 0x3b7   :  { %v1399_v26 = vpop.eup %1398  ;;  %v1076_v6 = vadd.f32 %v1068_v42, %v1873_v40 }
 0x3b8   :  { %v1401_v24 = vpop.eup %1400  ;;  %v1053_v47 = vadd.f32 1.0, %v1399_v26  ;;  %v1107_v39 = vmul.f32 %v1096_v62, %v1075_v27 }
 0x3b9   :  { %v1054_v50 = vadd.f32 1.0, %v1401_v24  ;;  %v1108_v48 = vmul.f32 %v1096_v62, %v1076_v6 }
 0x3ba   :  { %v1061_v53 = vmul.f32 %v1053_v47, %v1037_v2  ;;  %v1112_v43 = vadd.f32 %v1111_v57, %v1107_v39 }
 0x3bb   :  { %v1062_v63 = vmul.f32 %v1054_v50, %v1038_v7  ;;  %v1121_v16 = vadd.f32 %v1120_v10, %v1108_v48 }
 0x3bc   :  { %v1069_v8 = vmul.f32 %v1061_v53, %v1895_v60 }
 0x3bd   :  { %v1070_v14 = vmul.f32 %v1062_v63, %v1902_v21 }
 0x3be   :  { %v1077_v41 = vadd.f32 %v1069_v8, %v1879_v28 }
 0x3bf   :  { %v1078_v40 = vadd.f32 %v1070_v14, %v1884_v33 }
 0x3c0   :  { %v1109_v44 = vmul.f32 %v1101_v52, %v1077_v41 }
 0x3c1   :  { %v1110_v46 = vmul.f32 %v1101_v52, %v1078_v40 }
 0x3c2   :  { %v1113_v1 = vadd.f32 %v1112_v43, %v1109_v44 }
 0x3c3   :  { %v1122_v49 = vadd.f32 %v1121_v16, %v1110_v46 }
 0x3c4   :  { %v1114_v51 = vrot.slane %v1113_v1, 4 }
 0x3c5   :  { %v1123_v54 = vrot.slane %v1122_v49, 4 }
 0x3c6   :  { %v1115_v60 = vadd.f32 %v1114_v51, %v1113_v1 }
 0x3c7   :  { %v1124_v56 = vadd.f32 %v1123_v54, %v1122_v49 }
 0x3c8   :  { %v1116_v55 = vrot.slane %v1115_v60, 2 }
 0x3c9   :  { %v1125_v58 = vrot.slane %v1124_v56, 2 }
 0x3ca   :  { %v1117_v21 = vadd.f32 %v1116_v55, %v1115_v60 }
 0x3cb   :  { %v1126_v61 = vadd.f32 %v1125_v58, %v1124_v56 }
 0x3cc   :  { %v1118_v28 = vrot.slane %v1117_v21, 1 }
 0x3cd   :  { %v1127_v35 = vrot.slane %v1126_v61, 1 }
 0x3ce   :  { %v1119_v25 = vadd.f32 %v1118_v28, %v1117_v21 }
 0x3cf   :  { %v1128_v33 = vadd.f32 %v1127_v35, %v1126_v61 }
 0x3d0   :  { %v1136_v36 = vadd.f32 %v1135_v0, %v1119_v25 }
 0x3d1   :  { %v1137_v2 = vadd.f32 %v1135_v0, %v1128_v33 }
 0x3d2   :  { %v1138_v38 = vmul.f32 0.5, %v1136_v36 }
 0x3d3   :  { %v1139_v3 = vmul.f32 0.5, %v1137_v2 }
 0x3d4   :  { %1402 = vtanh.f32 %v1138_v38 }
 0x3d5   :  { %1404 = vtanh.f32 %v1139_v3 }
 0x3da   :  { %v1403_v5 = vpop.eup %1402 }
 0x3db   :  { %v1405_v7 = vpop.eup %1404  ;;  %v1142_v9 = vadd.f32 1.0, %v1403_v5 }
 0x3dc   :  { %v1143_v11 = vadd.f32 1.0, %v1405_v7 }
 0x3dd   :  { %v1144_v15 = vmul.f32 %v1142_v9, %v1138_v38 }
 0x3de   :  { %v1145_v13 = vmul.f32 %v1143_v11, %v1139_v3 }
 0x3e0   :  { %v1148_v17 = vrot.slane %v1145_v13, 7 }
 0x3e2   :  { %v1150_v18 = vsel %vm1149_vm2, %v1144_v15, %v1148_v17 }
 0x3e3   :  { %1156 = vst.msk [vmem:[#allocation3] sm:$0x3] %vm1154_vm3, %v1150_v18 }
 0x3e4   :  { %1167 = dma.vmem_to_hbm [thread:$0]  %s1163_s8, 32, %s1165_s6, [#allocation4]  }
 0x3e5   :  { %1430 = dma.done.wait [#allocation4], 32  }
 0x3e6   :  { %1431 = vsyncadd [#allocation4], 4294967264 }
 0x3e7   :  { %1172 = vsyncpa [#allocation4], 1 }

</bundles_post_ra>
